<compile_context>
chip_gen: v5e
topology: v5e:2x2
jax: 0.10.0
libtpu: 0.0.40
codegen_flags: <defaults>
</compile_context>

<pallas_src>
import functools

import jax
import jax.numpy as jnp
from jax.experimental import pallas as pl
from jax.experimental.pallas import tpu as pltpu


def _patch_merging_kernel(x_ref, gamma_ref, beta_ref, w_ref, o_ref, *, eps):
    # x_ref:     (TM, 4C)  merged-patch activations for this tile
    # gamma_ref: (1, 4C)   LayerNorm weight
    # beta_ref:  (1, 4C)   LayerNorm bias
    # w_ref:     (4C, 2C)  reduction weight (already transposed: y = x @ W)
    # o_ref:     (TM, 2C)
    x = x_ref[...].astype(jnp.float32)

    # LayerNorm over the last (4C) axis, biased variance, matching nn.LayerNorm.
    mean = jnp.mean(x, axis=-1, keepdims=True)
    xc = x - mean
    var = jnp.mean(xc * xc, axis=-1, keepdims=True)
    inv = jax.lax.rsqrt(var + eps)
    y = xc * inv * gamma_ref[...].astype(jnp.float32) + beta_ref[...].astype(jnp.float32)

    # reduction: Linear(4C -> 2C), no bias. f32 accumulation on the MXU.
    o_ref[...] = jnp.dot(
        y.astype(w_ref.dtype), w_ref[...], preferred_element_type=jnp.float32
    ).astype(o_ref.dtype)


def _round_up(a, b):
    return (a + b - 1) // b * b


def patch_merging_pallas(x, gamma, beta, w_reduction, input_resolution,
                         *, block_m=512, eps=1e-5):
    """x: (B, H*W, C). gamma/beta: (4C,). w_reduction: (4C, 2C) (= PyTorch weight.T)."""
    H, W = input_resolution
    B, L, C = x.shape
    assert L == H * W, "input feature has wrong size"
    assert H % 2 == 0 and W % 2 == 0, "x size must be even"
    C4, C2 = 4 * C, 2 * C
    assert w_reduction.shape == (C4, C2)

    # 2x2 spatial merge, matching torch.cat([x0, x1, x2, x3], -1):
    #   x0 = (h even, w even), x1 = (h odd, w even), x2 = (h even, w odd), x3 = (h odd, w odd)
    # i.e. merged channel axis enumerates (w_parity slow, h_parity fast, c fastest).
    xr = x.reshape(B, H // 2, 2, W // 2, 2, C)
    xm = jnp.transpose(xr, (0, 1, 3, 4, 2, 5)).reshape(B * (H // 2) * (W // 2), C4)

    M = xm.shape[0]
    TM = min(block_m, _round_up(M, 8))          # tile rows, multiple of 8 (f32 sublane)
    Mp = _round_up(M, TM)
    if Mp != M:
        xm = jnp.pad(xm, ((0, Mp - M), (0, 0)))  # padded rows are sliced off below

    gamma2 = gamma.reshape(1, C4)
    beta2 = beta.reshape(1, C4)

    itemsize = jnp.dtype(x.dtype).itemsize
    cost = pl.CostEstimate(
        flops=2 * Mp * C4 * C2,
        transcendentals=0,
        bytes_accessed=(Mp * C4 + Mp * C2 + C4 * C2 + 2 * C4) * itemsize,
    )

    out = pl.pallas_call(
        functools.partial(_patch_merging_kernel, eps=eps),
        out_shape=jax.ShapeDtypeStruct((Mp, C2), x.dtype),
        grid_spec=pltpu.PrefetchScalarGridSpec(
            num_scalar_prefetch=0,
            grid=(Mp // TM,),
            in_specs=[
                pl.BlockSpec((TM, C4), lambda i: (i, 0)),   # activations: tiled over M
                pl.BlockSpec((1, C4), lambda i: (0, 0)),    # LN gamma: resident
                pl.BlockSpec((1, C4), lambda i: (0, 0)),    # LN beta: resident
                pl.BlockSpec((C4, C2), lambda i: (0, 0)),   # reduction weight: resident
            ],
            out_specs=pl.BlockSpec((TM, C2), lambda i: (i, 0)),
        ),
        compiler_params=pltpu.CompilerParams(
            dimension_semantics=("parallel",),   # M tiles independent -> megacore on v7x
        ),
        cost_estimate=cost,
    )(xm, gamma2, beta2, w_reduction)

    out = out[:M]
    return out.reshape(B, (H // 2) * (W // 2), C2)


def _reference_patch_merging(x, gamma, beta, w_reduction, input_resolution, eps=1e-5):
    H, W = input_resolution
    B, L, C = x.shape
    xr = x.reshape(B, H, W, C)
    x0 = xr[:, 0::2, 0::2, :]
    x1 = xr[:, 1::2, 0::2, :]
    x2 = xr[:, 0::2, 1::2, :]
    x3 = xr[:, 1::2, 1::2, :]
    xm = jnp.concatenate([x0, x1, x2, x3], axis=-1).reshape(B, -1, 4 * C)
    mean = jnp.mean(xm, axis=-1, keepdims=True)
    var = jnp.mean((xm - mean) ** 2, axis=-1, keepdims=True)
    xn = (xm - mean) * jax.lax.rsqrt(var + eps) * gamma + beta
    return jnp.einsum("bnc,cd->bnd", xn, w_reduction,
                      precision=jax.lax.Precision.HIGHEST)


if __name__ == "__main__":
    # Small shapes consistent with the module: input_resolution=(16,16), dim=64.
    # 4C = 256 and 2C = 128 keep the contraction and output lane-dense (multiples of 128).
    B = 2
    H = W = 16
    C = 64

    key = jax.random.PRNGKey(0)
    kx, kw, kg, kb = jax.random.split(key, 4)

    x = jax.random.normal(kx, (B, H * W, C), dtype=jnp.float32)
    gamma = 1.0 + 0.1 * jax.random.normal(kg, (4 * C,), dtype=jnp.float32)
    beta = 0.05 * jax.random.normal(kb, (4 * C,), dtype=jnp.float32)
    # reduction weight stored transposed relative to PyTorch nn.Linear: (4C, 2C)
    w_reduction = jax.random.normal(kw, (4 * C, 2 * C), dtype=jnp.float32) * (
        1.0 / (4 * C) ** 0.5
    )

    y = patch_merging_pallas(x, gamma, beta, w_reduction, (H, W))
    y = jax.block_until_ready(y)

    y_ref = _reference_patch_merging(x, gamma, beta, w_reduction, (H, W))
    assert y.shape == (B, (H // 2) * (W // 2), 2 * C)
    assert jnp.allclose(y, y_ref, atol=1e-3, rtol=1e-3), "mismatch vs reference"

    print("KERNEL_OK")
</pallas_src>

<mosaic_0001>
module attributes {stable_mosaic.version = 11 : i64} {
  func.func @_patch_merging_kernel(%arg0: i32, %arg1: memref<128x256xf32, #tpu.memory_space<vmem>>, %arg2: memref<1x256xf32, #tpu.memory_space<vmem>>, %arg3: memref<1x256xf32, #tpu.memory_space<vmem>>, %arg4: memref<256x128xf32, #tpu.memory_space<vmem>>, %arg5: memref<128x128xf32, #tpu.memory_space<vmem>>) attributes {dimension_semantics = [#tpu.dimension_semantics<parallel>], iteration_bounds = array<i64: 1>, scalar_prefetch = 0 : i64, scratch_operands = 0 : i64, tpu.core_type = #tpu.core_type<tc>, window_params = [{transform_indices = @transform_0, window_bounds = array<i64: 128, 256>}, {pipeline_mode = #tpu.pipeline_mode<synchronous>, transform_indices = @transform_1, window_bounds = array<i64: 1, 256>}, {pipeline_mode = #tpu.pipeline_mode<synchronous>, transform_indices = @transform_2, window_bounds = array<i64: 1, 256>}, {pipeline_mode = #tpu.pipeline_mode<synchronous>, transform_indices = @transform_3, window_bounds = array<i64: 256, 128>}, {transform_indices = @transform_4, window_bounds = array<i64: 128, 128>}]} {
    %c0 = arith.constant 0 : index
    %c0_0 = arith.constant 0 : index
    %0 = vector.load %arg1[%c0, %c0_0] : memref<128x256xf32, #tpu.memory_space<vmem>>, vector<128x256xf32>
    %cst = arith.constant dense<0.000000e+00> : vector<128xf32>
    %1 = vector.multi_reduction <add>, %0, %cst [1] : vector<128x256xf32> to vector<128xf32>
    %2 = vector.shape_cast %1 : vector<128xf32> to vector<128x1xf32>
    %cst_1 = arith.constant 2.560000e+02 : f32
    %3 = vector.broadcast %cst_1 : f32 to vector<128x1xf32>
    %4 = arith.divf %2, %3 : vector<128x1xf32>
    %5 = vector.broadcast %4 : vector<128x1xf32> to vector<128x256xf32>
    %6 = arith.subf %0, %5 : vector<128x256xf32>
    %7 = arith.mulf %6, %6 : vector<128x256xf32>
    %cst_2 = arith.constant dense<0.000000e+00> : vector<128xf32>
    %8 = vector.multi_reduction <add>, %7, %cst_2 [1] : vector<128x256xf32> to vector<128xf32>
    %9 = vector.shape_cast %8 : vector<128xf32> to vector<128x1xf32>
    %cst_3 = arith.constant 2.560000e+02 : f32
    %10 = vector.broadcast %cst_3 : f32 to vector<128x1xf32>
    %11 = arith.divf %9, %10 : vector<128x1xf32>
    %cst_4 = arith.constant 9.99999974E-6 : f32
    %12 = vector.broadcast %cst_4 : f32 to vector<128x1xf32>
    %13 = arith.addf %11, %12 : vector<128x1xf32>
    %14 = math.rsqrt %13 : vector<128x1xf32>
    %15 = vector.broadcast %14 : vector<128x1xf32> to vector<128x256xf32>
    %16 = arith.mulf %6, %15 : vector<128x256xf32>
    %c0_5 = arith.constant 0 : index
    %c0_6 = arith.constant 0 : index
    %17 = vector.load %arg2[%c0_5, %c0_6] : memref<1x256xf32, #tpu.memory_space<vmem>>, vector<1x256xf32>
    %18 = vector.broadcast %17 : vector<1x256xf32> to vector<128x256xf32>
    %19 = arith.mulf %16, %18 : vector<128x256xf32>
    %c0_7 = arith.constant 0 : index
    %c0_8 = arith.constant 0 : index
    %20 = vector.load %arg3[%c0_7, %c0_8] : memref<1x256xf32, #tpu.memory_space<vmem>>, vector<1x256xf32>
    %21 = vector.broadcast %20 : vector<1x256xf32> to vector<128x256xf32>
    %22 = arith.addf %19, %21 : vector<128x256xf32>
    %c0_9 = arith.constant 0 : index
    %c0_10 = arith.constant 0 : index
    %23 = vector.load %arg4[%c0_9, %c0_10] : memref<256x128xf32, #tpu.memory_space<vmem>>, vector<256x128xf32>
    %cst_11 = arith.constant dense<0.000000e+00> : vector<128x128xf32>
    %24 = tpu.matmul %22, %23, %cst_11 {dimension_numbers = #tpu.dot_dimension_numbers<[1], [0], [0], [1], [0, 0, 1, 1], [], []>} : vector<128x256xf32>, vector<256x128xf32>, vector<128x128xf32> -> vector<128x128xf32>
    %c0_12 = arith.constant 0 : index
    %c0_13 = arith.constant 0 : index
    %25 = vector.load %arg5[%c0_12, %c0_13] : memref<128x128xf32, #tpu.memory_space<vmem>>, vector<128x128xf32>
    tpu.vector_store %arg5[%c0_12, %c0_13], %24 {strides = array<i32>} : memref<128x128xf32, #tpu.memory_space<vmem>>, vector<128x128xf32>,
    return
  }
  func.func @transform_0(%arg0: i32) -> (i32, i32) {
    %c0_i32 = arith.constant 0 : i32
    %c0_i32_0 = arith.constant 0 : i32
    return %arg0, %c0_i32 : i32, i32
  }
  func.func @transform_1(%arg0: i32) -> (i32, i32) {
    %c0_i32 = arith.constant 0 : i32
    %c0_i32_0 = arith.constant 0 : i32
    %c0_i32_1 = arith.constant 0 : i32
    return %c0_i32, %c0_i32_0 : i32, i32
  }
  func.func @transform_2(%arg0: i32) -> (i32, i32) {
    %c0_i32 = arith.constant 0 : i32
    %c0_i32_0 = arith.constant 0 : i32
    %c0_i32_1 = arith.constant 0 : i32
    return %c0_i32, %c0_i32_0 : i32, i32
  }
  func.func @transform_3(%arg0: i32) -> (i32, i32) {
    %c0_i32 = arith.constant 0 : i32
    %c0_i32_0 = arith.constant 0 : i32
    %c0_i32_1 = arith.constant 0 : i32
    return %c0_i32, %c0_i32_0 : i32, i32
  }
  func.func @transform_4(%arg0: i32) -> (i32, i32) {
    %c0_i32 = arith.constant 0 : i32
    %c0_i32_0 = arith.constant 0 : i32
    return %arg0, %c0_i32 : i32, i32
  }
}

</mosaic_0001>

<bundles_post_ra>
// kernel: tpu_custom_call.1
= control target key start
LH: loop header
LB: loop body
LE: loop exit
PB: predicated region body
PF: predicated region fallthrough
CT: control target
= control target key end

     0   :  { %9 = vsyncpa [#allocation3], 0  ;;  %s1666_s0 = inlined_call_operand.hbm [shape: f32[128,256], index: 0, kind: input, shape index: {}]   ;;  %s1667_s1 = inlined_call_operand.hbm [shape: f32[1,256], index: 1, kind: input, shape index: {}]   ;;  %s1668_s2 = inlined_call_operand.hbm [shape: f32[1,256], index: 2, kind: input, shape index: {}]   ;;  %s1669_s3 = inlined_call_operand.hbm [shape: f32[256,128], index: 3, kind: input, shape index: {}]   ;;  %s1670_s4 = inlined_call_operand.hbm [shape: f32[128,128], index: 4, kind: output, shape index: {}]  }
   0x1   :  { %10 = vsyncpa [#allocation6], 0 }
   0x2   :  { %11 = vsyncpa [#allocation9], 0  ;;  %s31_s17 = sshll.u32 %s1667_s1, 4  ;;  %s32_s17 = int_to_ptr.hbm [resolvable:$true] %s31_s17 }
   0x3   :  { %12 = vsyncpa [#allocation4], 0  ;;  %s995_s18 = smov [#allocation5]   ;;  %s17_s22 = sshll.u32 %s1666_s0, 4  ;;  %s18_s22 = int_to_ptr.hbm [resolvable:$true] %s17_s22 }
   0x4   :  { %s33_s19 = sshll.u32 %s995_s18, 4  ;;  %s996_s23 = smov [#allocation2]   ;;  %s34_s19 = int_to_ptr.vmem [resolvable:$true] %s33_s19 }
   0x5   :  { %36 = dma.hbm_to_vmem [thread:$0]  %s32_s17, 32, %s34_s19, [#allocation6]  }
   0x6   :  { %s19_s24 = sshll.u32 %s996_s23, 4  ;;  %s997_s25 = smov 256   ;;  %s20_s24 = int_to_ptr.vmem [resolvable:$true] %s19_s24 }
   0x7   :  { %s998_s26 = smov 16   ;;  %s42_s1 = sshll.u32 %s1668_s2, 4  ;;  %s43_s1 = int_to_ptr.hbm [resolvable:$true] %s42_s1 }
   0x8   :  { %25 = dma.hbm_to_vmem [thread:$0]  %s18_s22, 4096, %s20_s24, [#allocation3], %s997_s25, %s997_s25, %s998_s26  }
   0x9   :  { %s999_s29 = smov [#allocation7]   ;;  %s52_s0 = sshll.u32 %s1669_s3, 4  ;;  %s53_s0 = int_to_ptr.hbm [resolvable:$true] %s52_s0 }
   0xa   :  { %s44_s30 = sshll.u32 %s999_s29, 4  ;;  %s1000_s7 = smov [#allocation8]   ;;  %s45_s30 = int_to_ptr.vmem [resolvable:$true] %s44_s30 }
   0xb   :  { %47 = dma.hbm_to_vmem [thread:$0]  %s43_s1, 32, %s45_s30, [#allocation6]  }
   0xc   :  { %s54_s8 = sshll.u32 %s1000_s7, 4  ;;  %s1001_s9 = smov 128   ;;  %s55_s8 = int_to_ptr.vmem [resolvable:$true] %s54_s8 }
   0xd   :  { %s1002_s10 = smov 8  }
   0xe   :  { %60 = dma.hbm_to_vmem [thread:$0]  %s53_s0, 4096, %s55_s8, [#allocation9], %s1001_s9, %s1001_s9, %s1002_s10  }
   0xf   :  { %987 = dma.done.wait [#allocation3], 4096  }
  0x10   :  { %988 = vsyncadd [#allocation3], 4294963200 }
  0x11   :  { %989 = dma.done.wait [#allocation6], 64  }
  0x12   :  { %990 = vsyncadd [#allocation6], 4294967232 }
  0x13   :  { %991 = dma.done.wait [#allocation9], 4096  }
  0x14   :  { %992 = vsyncadd [#allocation9], 4294963200  ;;  %v1045_v0 = vld [vmem:[#allocation2 + $0xa0] sm:$0xff]  ;;  %v1047_v1 = vld [vmem:[#allocation2 + $0xa8] sm:$0xff]  ;;  %v1003_v42 = vmov 256.0   ;;  %s1004_s2 = smov [#allocation10]  }
  0x15   :  { %v1049_v2 = vld [vmem:[#allocation2 + $0x90] sm:$0xff]  ;;  %v139_v3 = vadd.f32 %v1047_v1, %v1045_v0  ;;  %v1053_v4 = vld [vmem:[#allocation2 + $0x98] sm:$0xff]  ;;  %v1055_v5 = vld [vmem:[#allocation2 + $0x80] sm:$0xff]  ;;  %833 = vrcp.f32 %v1003_v42  ;;  %s774_s3 = sshll.u32 %s1004_s2, 4  ;;  %s776_s13 = sshll.u32 %s1670_s4, 4  ;;  %s775_s3 = int_to_ptr.vmem [resolvable:$true] %s774_s3  ;;  %s777_s13 = int_to_ptr.hbm [resolvable:$true] %s776_s13 }
  0x16   :  { %v1057_v6 = vld [vmem:[#allocation2 + $0x88] sm:$0xff]  ;;  %v136_v7 = vadd.f32 %v1053_v4, %v1049_v2  ;;  %v1063_v9 = vld [vmem:[#allocation2 + $0x20] sm:$0xff]  ;;  %v1067_v11 = vld [vmem:[#allocation2 + $0x10] sm:$0xff] }
  0x17   :  { %v133_v8 = vadd.f32 %v1057_v6, %v1055_v5  ;;  %140 = vadd.xlane.f32.xlu2 %v139_v3  ;;  %v1065_v10 = vld [vmem:[#allocation2 + $0x28] sm:$0xff]  ;;  %v1069_v12 = vld [vmem:[#allocation2 + $0x18] sm:$0xff]  ;;  %v1071_v13 = vld [vmem:[#allocation2] sm:$0xff] }
  0x18   :  { %137 = vadd.xlane.f32.xlu1 %v136_v7  ;;  %v1073_v14 = vld [vmem:[#allocation2 + $0x8] sm:$0xff]  ;;  %v115_v15 = vadd.f32 %v1065_v10, %v1063_v9  ;;  %v112_v16 = vadd.f32 %v1069_v12, %v1067_v11  ;;  %v1081_v18 = vld [vmem:[#allocation2 + $0xc0] sm:$0xff]  ;;  %v1085_v20 = vld [vmem:[#allocation2 + $0x30] sm:$0xff] }
  0x19   :  { %134 = vadd.xlane.f32.xlu0 %v133_v8  ;;  %v109_v17 = vadd.f32 %v1073_v14, %v1071_v13  ;;  %v1083_v19 = vld [vmem:[#allocation2 + $0xc8] sm:$0xff]  ;;  %v1087_v21 = vld [vmem:[#allocation2 + $0x38] sm:$0xff]  ;;  %v1089_v22 = vld [vmem:[#allocation2 + $0xb0] sm:$0xff] }
  0x1a   :  { %v1091_v23 = vld [vmem:[#allocation2 + $0xb8] sm:$0xff]  ;;  %v145_v24 = vadd.f32 %v1083_v19, %v1081_v18  ;;  %v118_v25 = vadd.f32 %v1087_v21, %v1085_v20  ;;  %v1099_v27 = vld [vmem:[#allocation2 + $0x50] sm:$0xff]  ;;  %v1107_v31 = vld [vmem:[#allocation2 + $0x40] sm:$0xff] }
  0x1b   :  { %v142_v26 = vadd.f32 %v1091_v23, %v1089_v22  ;;  %v1101_v28 = vld [vmem:[#allocation2 + $0x58] sm:$0xff]  ;;  %v1103_v29 = vld [vmem:[#allocation2 + $0xd0] sm:$0xff]  ;;  %v1109_v32 = vld [vmem:[#allocation2 + $0x48] sm:$0xff]  ;;  %v834_v43 = vpop.eup %833 }
  0x1c   :  { %v1105_v30 = vld [vmem:[#allocation2 + $0xd8] sm:$0xff]  ;;  %v124_v33 = vadd.f32 %v1101_v28, %v1099_v27  ;;  %v121_v35 = vadd.f32 %v1109_v32, %v1107_v31  ;;  %v1117_v36 = vld [vmem:[#allocation2 + $0x60] sm:$0xff]  ;;  %v1119_v37 = vld [vmem:[#allocation2 + $0x68] sm:$0xff]  ;;  %v158_v44 = vmul.f32 256.0, %v834_v43  ;;  %vm162_vm0 = vweird.f32 %v834_v43 }
  0x1d   :  { %v148_v34 = vadd.f32 %v1105_v30, %v1103_v29  ;;  %v1121_v38 = vld [vmem:[#allocation2 + $0xe0] sm:$0xff]  ;;  %v1123_v39 = vld [vmem:[#allocation2 + $0xe8] sm:$0xff]  ;;  %v127_v40 = vadd.f32 %v1119_v37, %v1117_v36 }
  0x1e   :  { %v151_v41 = vadd.f32 %v1123_v39, %v1121_v38  ;;  %v159_v45 = vsub.f32 1.0, %v158_v44 }
  0x1f   :  { %116 = vadd.xlane.f32.xlu2 %v115_v15 }
  0x20   :  { %113 = vadd.xlane.f32.xlu1 %v112_v16  ;;  %v160_v46 = vmul.f32 %v834_v43, %v159_v45  ;;  %v1166_v16 = vld [vmem:[#allocation2 + $0xf0] sm:$0xff] }
  0x21   :  { %110 = vadd.xlane.f32.xlu0 %v109_v17  ;;  %v1168_v17 = vld [vmem:[#allocation2 + $0xf8] sm:$0xff] }
  0x22   :  { %v161_v47 = vadd.f32 %v834_v43, %v160_v46 }
  0x24   :  { %v1129_v48 = vsel %vm162_vm0, %v834_v43, %v161_v47  ;;  %v607_v47 = vld [vmem:[#allocation8 + $0x78] sm:$0xff] }
  0x25   :  { %791 = vmatpush.msra.mxu2 %v607_v47  ;;  %624 = vmatpush.msra.mxu0 %v607_v47 }
  0x27   :  { %146 = vadd.xlane.f32.xlu2 %v145_v24 }
  0x28   :  { %119 = vadd.xlane.f32.xlu1 %v118_v25 }
  0x29   :  { %143 = vadd.xlane.f32.xlu0 %v142_v26 }
  0x2f   :  { %125 = vadd.xlane.f32.xlu2 %v124_v33  ;;  %v154_v33 = vadd.f32 %v1168_v17, %v1166_v16 }
  0x30   :  { %149 = vadd.xlane.f32.xlu1 %v148_v34 }
  0x31   :  { %122 = vadd.xlane.f32.xlu0 %v121_v35 }
  0x37   :  { %128 = vadd.xlane.f32.xlu2 %v127_v40 }
  0x39   :  { %152 = vadd.xlane.f32.xlu0 %v151_v41 }
  0x8a   :  { %v141_v49 = vpop.xlane.xlu2 %140 }
  0x8b   :  { %v174_v50 = vmul.f32 %v1129_v48, %v141_v49  ;;  %v138_v51 = vpop.xlane.xlu1 %137  ;;  %v623_v49 = vld [vmem:[#allocation8 + $0xf8] sm:$0xff] }
  0x8c   :  { %v135_v52 = vpop.xlane.xlu0 %134  ;;  %v173_v53 = vmul.f32 %v1129_v48, %v138_v51  ;;  %807 = vmatpush.msra.mxu3 %v623_v49  ;;  %689 = vmatpush.msra.mxu1 %v623_v49 }
  0x8d   :  { %v172_v54 = vmul.f32 %v1129_v48, %v135_v52  ;;  %v1147_v59 = vsub.f32 %v1045_v0, %v174_v50  ;;  %v1150_v60 = vsub.f32 %v1047_v1, %v174_v50  ;;  %v606_v50 = vld [vmem:[#allocation8 + $0x70] sm:$0xff] }
  0x8e   :  { %v1135_v55 = vsub.f32 %v1049_v2, %v173_v53  ;;  %v1138_v56 = vsub.f32 %v1053_v4, %v173_v53  ;;  %v1201_v53 = vld [vmem:[#allocation2 + $0x70] sm:$0xff]  ;;  %792 = vmatpush.msra.mxu2 %v606_v50  ;;  %625 = vmatpush.msra.mxu0 %v606_v50 }
  0x8f   :  { %v1141_v57 = vsub.f32 %v1055_v5, %v172_v54  ;;  %v1144_v58 = vsub.f32 %v1057_v6, %v172_v54  ;;  %v232_v1 = vmul.f32 %v1147_v59, %v1147_v59  ;;  %v233_v15 = vmul.f32 %v1150_v60, %v1150_v60  ;;  %v1203_v54 = vld [vmem:[#allocation2 + $0x78] sm:$0xff] }
  0x90   :  { %v230_v61 = vmul.f32 %v1135_v55, %v1135_v55  ;;  %v231_v62 = vmul.f32 %v1138_v56, %v1138_v56 }
  0x91   :  { %v228_v63 = vmul.f32 %v1141_v57, %v1141_v57  ;;  %v229_v2 = vmul.f32 %v1144_v58, %v1144_v58  ;;  %v274_v35 = vadd.f32 %v233_v15, %v232_v1 }
  0x92   :  { %v117_v3 = vpop.xlane.xlu2 %116  ;;  %v271_v4 = vadd.f32 %v231_v62, %v230_v61  ;;  %v622_v61 = vld [vmem:[#allocation8 + $0xf0] sm:$0xff] }
  0x93   :  { %v268_v5 = vadd.f32 %v229_v2, %v228_v63  ;;  %v114_v0 = vpop.xlane.xlu1 %113  ;;  %v166_v46 = vmul.f32 %v1129_v48, %v117_v3  ;;  %808 = vmatpush.msra.mxu3 %v622_v61  ;;  %690 = vmatpush.msra.mxu1 %v622_v61 }
  0x94   :  { %v111_v6 = vpop.xlane.xlu0 %110  ;;  %v165_v7 = vmul.f32 %v1129_v48, %v114_v0  ;;  %272 = vadd.xlane.f32.xlu2 %v271_v4 }
  0x95   :  { %v164_v8 = vmul.f32 %v1129_v48, %v111_v6  ;;  %269 = vadd.xlane.f32.xlu1 %v268_v5  ;;  %v1216_v3 = vsub.f32 %v1063_v9, %v166_v46  ;;  %v1219_v4 = vsub.f32 %v1065_v10, %v166_v46 }
  0x96   :  { %v1177_v26 = vsub.f32 %v1067_v11, %v165_v7  ;;  %v1182_v34 = vsub.f32 %v1069_v12, %v165_v7 }
  0x97   :  { %v1171_v24 = vsub.f32 %v1071_v13, %v164_v8  ;;  %v1174_v25 = vsub.f32 %v1073_v14, %v164_v8  ;;  %v216_v15 = vmul.f32 %v1216_v3, %v1216_v3 }
  0x98   :  { %v214_v11 = vmul.f32 %v1177_v26, %v1177_v26  ;;  %v215_v45 = vmul.f32 %v1182_v34, %v1182_v34 }
  0x99   :  { %v212_v40 = vmul.f32 %v1171_v24, %v1171_v24  ;;  %v213_v13 = vmul.f32 %v1174_v25, %v1174_v25 }
  0x9a   :  { %v147_v41 = vpop.xlane.xlu2 %146  ;;  %v247_v2 = vadd.f32 %v215_v45, %v214_v11 }
  0x9b   :  { %v244_v42 = vadd.f32 %v213_v13, %v212_v40  ;;  %v120_v14 = vpop.xlane.xlu1 %119  ;;  %v176_v0 = vmul.f32 %v1129_v48, %v147_v41 }
  0x9c   :  { %v144_v43 = vpop.xlane.xlu0 %143  ;;  %v167_v44 = vmul.f32 %v1129_v48, %v120_v14  ;;  %275 = vadd.xlane.f32.xlu2 %v274_v35 }
  0x9d   :  { %155 = vadd.xlane.f32.xlu1 %v154_v33  ;;  %v175_v12 = vmul.f32 %v1129_v48, %v144_v43  ;;  %245 = vadd.xlane.f32.xlu0 %v244_v42  ;;  %v217_v33 = vmul.f32 %v1219_v4, %v1219_v4  ;;  %v1241_v13 = vsub.f32 %v1081_v18, %v176_v0 }
  0x9e   :  { %v1196_v51 = vsub.f32 %v1085_v20, %v167_v44  ;;  %v1199_v52 = vsub.f32 %v1087_v21, %v167_v44  ;;  %v1254_v11 = vsub.f32 %v1083_v19, %v176_v0 }
  0x9f   :  { %v1206_v62 = vsub.f32 %v1089_v22, %v175_v12  ;;  %v1209_v63 = vsub.f32 %v1091_v23, %v175_v12  ;;  %v130_v22 = vadd.f32 %v1203_v54, %v1201_v53 }
  0xa0   :  { %v218_v20 = vmul.f32 %v1196_v51, %v1196_v51  ;;  %v219_v21 = vmul.f32 %v1199_v52, %v1199_v52  ;;  %v237_v61 = vmul.f32 %v1254_v11, %v1254_v11 }
  0xa1   :  { %v234_v7 = vmul.f32 %v1206_v62, %v1206_v62  ;;  %v235_v9 = vmul.f32 %v1209_v63, %v1209_v63 }
  0xa2   :  { %v126_v23 = vpop.xlane.xlu2 %125  ;;  %v253_v5 = vadd.f32 %v219_v21, %v218_v20 }
  0xa3   :  { %v150_v6 = vpop.xlane.xlu1 %149  ;;  %v277_v41 = vadd.f32 %v235_v9, %v234_v7  ;;  %v169_v47 = vmul.f32 %v1129_v48, %v126_v23  ;;  %v605_v7 = vld [vmem:[#allocation8 + $0x68] sm:$0xff] }
  0xa4   :  { %v123_v1 = vpop.xlane.xlu0 %122  ;;  %v177_v10 = vmul.f32 %v1129_v48, %v150_v6  ;;  %254 = vadd.xlane.f32.xlu2 %v253_v5  ;;  %v621_v9 = vld [vmem:[#allocation8 + $0xe8] sm:$0xff]  ;;  %793 = vmatpush.msra.mxu2 %v605_v7 }
  0xa5   :  { %248 = vadd.xlane.f32.xlu1 %v247_v2  ;;  %v168_v8 = vmul.f32 %v1129_v48, %v123_v1  ;;  %131 = vadd.xlane.f32.xlu0 %v130_v22  ;;  %v1287_v23 = vsub.f32 %v1101_v28, %v169_v47 }
  0xa6   :  { %v1235_v35 = vsub.f32 %v1103_v29, %v177_v10  ;;  %v1238_v40 = vsub.f32 %v1105_v30, %v177_v10  ;;  %v250_v30 = vadd.f32 %v217_v33, %v216_v15  ;;  %809 = vmatpush.msra.mxu3 %v621_v9  ;;  %v604_v10 = vld [vmem:[#allocation8 + $0x60] sm:$0xff]  ;;  %626 = vmatpush.msra.mxu0 %v605_v7  ;;  %v603_v15 = vld [vmem:[#allocation8 + $0x58] sm:$0xff] }
  0xa7   :  { %v1244_v42 = vsub.f32 %v1107_v31, %v168_v8  ;;  %v1247_v14 = vsub.f32 %v1109_v32, %v168_v8  ;;  %v236_v31 = vmul.f32 %v1241_v13, %v1241_v13  ;;  %v620_v8 = vld [vmem:[#allocation8 + $0xe0] sm:$0xff]  ;;  %691 = vmatpush.msra.mxu1 %v621_v9  ;;  %794 = vmatpush.msra.mxu2 %v604_v10  ;;  %v619_v33 = vld [vmem:[#allocation8 + $0xd8] sm:$0xff] }
  0xa8   :  { %v238_v43 = vmul.f32 %v1235_v35, %v1235_v35  ;;  %v239_v29 = vmul.f32 %v1238_v40, %v1238_v40  ;;  %810 = vmatpush.msra.mxu3 %v620_v8  ;;  %627 = vmatpush.msra.mxu0 %v604_v10 }
  0xa9   :  { %v220_v46 = vmul.f32 %v1244_v42, %v1244_v42  ;;  %v221_v19 = vmul.f32 %v1247_v14, %v1247_v14  ;;  %v280_v0 = vadd.f32 %v237_v61, %v236_v31  ;;  %692 = vmatpush.msra.mxu1 %v620_v8  ;;  %795 = vmatpush.msra.mxu2 %v603_v15  ;;  %v598_v31 = vld [vmem:[#allocation8 + $0x30] sm:$0xff]  ;;  %v612_v61 = vld [vmem:[#allocation8 + $0xa0] sm:$0xff] }
  0xaa   :  { %v129_v44 = vpop.xlane.xlu2 %128  ;;  %v283_v18 = vadd.f32 %v239_v29, %v238_v43  ;;  %811 = vmatpush.msra.mxu3 %v619_v33  ;;  %v618_v43 = vld [vmem:[#allocation8 + $0xd0] sm:$0xff]  ;;  %628 = vmatpush.msra.mxu0 %v603_v15  ;;  %v601_v29 = vld [vmem:[#allocation8 + $0x48] sm:$0xff] }
  0xab   :  { %v170_v12 = vmul.f32 %v1129_v48, %v129_v44  ;;  %693 = vmatpush.msra.mxu1 %v619_v33  ;;  %v600_v44 = vld [vmem:[#allocation8 + $0x40] sm:$0xff] }
  0xac   :  { %v153_v45 = vpop.xlane.xlu0 %152  ;;  %284 = vadd.xlane.f32.xlu2 %v283_v18  ;;  %812 = vmatpush.msra.mxu3 %v618_v43  ;;  %v616_v18 = vld [vmem:[#allocation8 + $0xc0] sm:$0xff] }
  0xad   :  { %278 = vadd.xlane.f32.xlu1 %v277_v41  ;;  %v178_v32 = vmul.f32 %v1129_v48, %v153_v45  ;;  %v1266_v49 = vsub.f32 %v1117_v36, %v170_v12  ;;  %v1269_v50 = vsub.f32 %v1119_v37, %v170_v12  ;;  %251 = vadd.xlane.f32.xlu0 %v250_v30  ;;  %v602_v41 = vld [vmem:[#allocation8 + $0x50] sm:$0xff]  ;;  %v617_v30 = vld [vmem:[#allocation8 + $0xc8] sm:$0xff]  ;;  %v599_v12 = vld [vmem:[#allocation8 + $0x38] sm:$0xff] }
  0xae   :  { %v256_v36 = vadd.f32 %v221_v19, %v220_v46  ;;  %v1284_v37 = vsub.f32 %v1099_v27, %v169_v47  ;;  %v223_v27 = vmul.f32 %v1287_v23, %v1287_v23  ;;  %796 = vmatpush.msra.mxu2 %v602_v41  ;;  %629 = vmatpush.msra.mxu0 %v602_v41  ;;  %v615_v45 = vld [vmem:[#allocation8 + $0xb8] sm:$0xff]  ;;  %v597_v46 = vld [vmem:[#allocation8 + $0x28] sm:$0xff]  ;;  %v596_v47 = vld [vmem:[#allocation8 + $0x20] sm:$0xff] }
  0xaf   :  { %v224_v2 = vmul.f32 %v1266_v49, %v1266_v49  ;;  %v225_v20 = vmul.f32 %v1269_v50, %v1269_v50  ;;  %v1278_v21 = vsub.f32 %v1121_v38, %v178_v32  ;;  %v1281_v22 = vsub.f32 %v1123_v39, %v178_v32  ;;  %694 = vmatpush.msra.mxu1 %v618_v43  ;;  %v614_v32 = vld [vmem:[#allocation8 + $0xb0] sm:$0xff]  ;;  %v613_v19 = vld [vmem:[#allocation8 + $0xa8] sm:$0xff] }
  0xb0   :  { %v222_v39 = vmul.f32 %v1284_v37, %v1284_v37  ;;  %797 = vmatpush.msra.mxu2 %v601_v29  ;;  %813 = vmatpush.msra.mxu3 %v617_v30 }
  0xb1   :  { %v262_v5 = vadd.f32 %v225_v20, %v224_v2  ;;  %v240_v6 = vmul.f32 %v1278_v21, %v1278_v21  ;;  %v241_v38 = vmul.f32 %v1281_v22, %v1281_v22  ;;  %630 = vmatpush.msra.mxu0 %v601_v29  ;;  %695 = vmatpush.msra.mxu1 %v617_v30  ;;  %v595_v2 = vld [vmem:[#allocation8 + $0x18] sm:$0xff] }
  0xb2   :  { %v259_v28 = vadd.f32 %v223_v27, %v222_v39  ;;  %798 = vmatpush.msra.mxu2 %v600_v44  ;;  %814 = vmatpush.msra.mxu3 %v616_v18  ;;  %v611_v20 = vld [vmem:[#allocation8 + $0x98] sm:$0xff]  ;;  %v608_v39 = vld [vmem:[#allocation8 + $0x80] sm:$0xff] }
  0xb3   :  { %v286_v1 = vadd.f32 %v241_v38, %v240_v6  ;;  %631 = vmatpush.msra.mxu0 %v600_v44  ;;  %696 = vmatpush.msra.mxu1 %v616_v18  ;;  %v609_v6 = vld [vmem:[#allocation8 + $0x88] sm:$0xff]  ;;  %v592_v38 = vld [vmem:[#allocation8] sm:$0xff] }
  0xb4   :  { %263 = vadd.xlane.f32.xlu2 %v262_v5  ;;  %799 = vmatpush.msra.mxu2 %v599_v12  ;;  %v610_v5 = vld [vmem:[#allocation8 + $0x90] sm:$0xff] }
  0xb5   :  { %257 = vadd.xlane.f32.xlu1 %v256_v36  ;;  %281 = vadd.xlane.f32.xlu0 %v280_v0  ;;  %v594_v36 = vld [vmem:[#allocation8 + $0x10] sm:$0xff]  ;;  %v593_v0 = vld [vmem:[#allocation8 + $0x8] sm:$0xff] }
  0xb6   :  { %815 = vmatpush.msra.mxu3 %v615_v45  ;;  %632 = vmatpush.msra.mxu0 %v599_v12 }
  0xb7   :  { %697 = vmatpush.msra.mxu1 %v615_v45  ;;  %800 = vmatpush.msra.mxu2 %v598_v31 }
  0xb8   :  { %816 = vmatpush.msra.mxu3 %v614_v32  ;;  %633 = vmatpush.msra.mxu0 %v598_v31 }
  0xb9   :  { %698 = vmatpush.msra.mxu1 %v614_v32  ;;  %801 = vmatpush.msra.mxu2 %v597_v46 }
  0xba   :  { %817 = vmatpush.msra.mxu3 %v613_v19  ;;  %634 = vmatpush.msra.mxu0 %v597_v46 }
  0xbb   :  { %699 = vmatpush.msra.mxu1 %v613_v19  ;;  %802 = vmatpush.msra.mxu2 %v596_v47 }
  0xbc   :  { %818 = vmatpush.msra.mxu3 %v612_v61  ;;  %635 = vmatpush.msra.mxu0 %v596_v47 }
  0xbd   :  { %287 = vadd.xlane.f32.xlu1 %v286_v1  ;;  %260 = vadd.xlane.f32.xlu0 %v259_v28 }
  0xbe   :  { %700 = vmatpush.msra.mxu1 %v612_v61  ;;  %803 = vmatpush.msra.mxu2 %v595_v2 }
  0xbf   :  { %819 = vmatpush.msra.mxu3 %v611_v20  ;;  %636 = vmatpush.msra.mxu0 %v595_v2 }
  0xc0   :  { %701 = vmatpush.msra.mxu1 %v611_v20  ;;  %804 = vmatpush.msra.mxu2 %v594_v36 }
  0xc1   :  { %820 = vmatpush.msra.mxu3 %v610_v5  ;;  %637 = vmatpush.msra.mxu0 %v594_v36 }
  0xc2   :  { %702 = vmatpush.msra.mxu1 %v610_v5  ;;  %805 = vmatpush.msra.mxu2 %v593_v0 }
  0xc3   :  { %821 = vmatpush.msra.mxu3 %v609_v6  ;;  %638 = vmatpush.msra.mxu0 %v593_v0 }
  0xc4   :  { %703 = vmatpush.msra.mxu1 %v609_v6  ;;  %806 = vmatpush.msra.mxu2 %v592_v38 }
  0xc5   :  { %822 = vmatpush.msra.mxu3 %v608_v39  ;;  %639 = vmatpush.msra.mxu0 %v592_v38  ;;  %v516_v38 = vld [vmem:[#allocation5] sm:$0x3] }
  0xc6   :  { %704 = vmatpush.msra.mxu1 %v608_v39 }
 0x107   :  { %v273_v27 = vpop.xlane.xlu2 %272 }
 0x108   :  { %v270_v1 = vpop.xlane.xlu1 %269  ;;  %v301_v28 = vmul.f32 %v273_v27, %v1129_v48 }
 0x109   :  { %v300_v7 = vmul.f32 %v270_v1, %v1129_v48  ;;  %v554_v1 = vld [vmem:[#allocation7] sm:$0x3] }
 0x10a   :  { %v1299_v9 = vadd.f32 1e-05, %v301_v28 }
 0x10b   :  { %v316_v10 = vadd.f32 1e-05, %v300_v7 }
 0x10c   :  { %835 = vrsqrt.f32 %v1299_v9  ;;  %vm420_vm4 = vweird.f32 %v1299_v9 }
 0x10d   :  { %837 = vrsqrt.f32 %v316_v10  ;;  %vm410_vm2 = vweird.f32 %v316_v10 }
 0x10f   :  { %v276_v8 = vpop.xlane.xlu2 %275 }
 0x110   :  { %v156_v15 = vpop.xlane.xlu1 %155  ;;  %v302_v33 = vmul.f32 %v276_v8, %v1129_v48  ;;  %v246_v43 = vpop.xlane.xlu0 %245 }
 0x111   :  { %v179_v41 = vmul.f32 %v1129_v48, %v156_v15  ;;  %v292_v29 = vmul.f32 %v246_v43, %v1129_v48  ;;  %v1338_v43 = vperm.slane %v516_v38, 0 }
 0x112   :  { %v1305_v30 = vpop.eup %835  ;;  %v1307_v44 = vadd.f32 1e-05, %v302_v33 }
 0x113   :  { %v1310_v18 = vsub.f32 %v1166_v16, %v179_v41  ;;  %v1313_v12 = vsub.f32 %v1168_v17, %v179_v41  ;;  %v838_v45 = vpop.eup %837  ;;  %v415_v31 = vmul.f32 %v1305_v30, %v1299_v9  ;;  %v1317_v32 = vadd.f32 1e-05, %v292_v29 }
 0x114   :  { %v405_v46 = vmul.f32 %v838_v45, %v316_v10  ;;  %839 = vrsqrt.f32 %v1307_v44  ;;  %vm411_vm1 = vweird.f32 %v838_v45  ;;  %v1340_v29 = vperm.slane %v516_v38, 1 }
 0x115   :  { %1674 = vst [vmem:[#allocation15_spill] sm:$0xff] %v1313_v12  ;;  %v416_v19 = vmul.f32 %v1305_v30, %v415_v31  ;;  %841 = vrsqrt.f32 %v1317_v32  ;;  %v242_v16 = vmul.f32 %v1310_v18, %v1310_v18  ;;  %v243_v17 = vmul.f32 %v1313_v12, %v1313_v12  ;;  %vm412_vm3 = vmor %vm410_vm2, %vm411_vm1 }
 0x116   :  { %v406_v47 = vmul.f32 %v838_v45, %v405_v46  ;;  %vm421_vm5 = vweird.f32 %v1305_v30  ;;  %vm330_vm8 = vweird.f32 %v1317_v32  ;;  %vm430_vm10 = vweird.f32 %v1307_v44 }
 0x117   :  { %v255_v61 = vpop.xlane.xlu2 %254  ;;  %v289_v6 = vadd.f32 %v243_v17, %v242_v16  ;;  %v417_v39 = vmul.f32 0.5, %v416_v19  ;;  %vm1373_vm6 = vmor %vm420_vm4, %vm421_vm5 }
 0x118   :  { %v249_v2 = vpop.xlane.xlu1 %248  ;;  %v407_v20 = vmul.f32 0.5, %v406_v47  ;;  %v295_v36 = vmul.f32 %v255_v61, %v1129_v48  ;;  %v132_v0 = vpop.xlane.xlu0 %131  ;;  %v1347_v47 = vperm.slane %v554_v1, 0 }
 0x119   :  { %v293_v5 = vmul.f32 %v249_v2, %v1129_v48  ;;  %v171_v27 = vmul.f32 %v1129_v48, %v132_v0  ;;  %290 = vadd.xlane.f32.xlu0 %v289_v6  ;;  %v418_v19 = vsub.f32 1.5, %v417_v39 }
 0x11a   :  { %v1329_v28 = vpop.eup %839  ;;  %v408_v7 = vsub.f32 1.5, %v407_v20  ;;  %v1331_v8 = vadd.f32 1e-05, %v295_v36 }
 0x11b   :  { %v1333_v15 = vadd.f32 1e-05, %v293_v5  ;;  %v842_v33 = vpop.eup %841  ;;  %v1336_v41 = vsub.f32 %v1201_v53, %v171_v27  ;;  %v425_v16 = vmul.f32 %v1329_v28, %v1307_v44  ;;  %v1350_v17 = vsub.f32 %v1203_v54, %v171_v27 }
 0x11c   :  { %v409_v31 = vmul.f32 %v838_v45, %v408_v7  ;;  %v325_v46 = vmul.f32 %v842_v33, %v1317_v32  ;;  %843 = vrsqrt.f32 %v1331_v8  ;;  %vm331_vm7 = vweird.f32 %v842_v33 }
 0x11d   :  { %1675 = vst [vmem:[#allocation16_spill] sm:$0xff] %v1336_v41  ;;  %845 = vrsqrt.f32 %v1333_v15  ;;  %v226_v10 = vmul.f32 %v1336_v41, %v1336_v41  ;;  %v227_v39 = vmul.f32 %v1350_v17, %v1350_v17  ;;  %v426_v27 = vmul.f32 %v1329_v28, %v425_v16  ;;  %vm332_vm9 = vmor %vm330_vm8, %vm331_vm7 }
 0x11e   :  { %v326_v53 = vmul.f32 %v842_v33, %v325_v46  ;;  %1676 = vst [vmem:[#allocation17_spill] sm:$0xff] %v1350_v17  ;;  %v413_v61 = vsel %vm412_vm3, %v838_v45, %v409_v31  ;;  %v419_v45 = vmul.f32 %v1305_v30, %v418_v19  ;;  %v1365_v31 = vperm.slane %v554_v1, 1 }
 0x11f   :  { %v285_v2 = vpop.xlane.xlu2 %284  ;;  %v500_v36 = vmul.f32 %v413_v61, %v1141_v57  ;;  %v501_v5 = vmul.f32 %v413_v61, %v1144_v58  ;;  %v265_v19 = vadd.f32 %v227_v39, %v226_v10  ;;  %vm431_vm11 = vweird.f32 %v1329_v28 }
 0x120   :  { %v279_v20 = vpop.xlane.xlu1 %278  ;;  %v327_v0 = vmul.f32 0.5, %v326_v53  ;;  %v305_v6 = vmul.f32 %v285_v2, %v1129_v48  ;;  %v252_v38 = vpop.xlane.xlu0 %251  ;;  %v423_v10 = vsel %vm1373_vm6, %v1305_v30, %v419_v45  ;;  %vm340_vm12 = vweird.f32 %v1333_v15  ;;  %vm1472_vm4 = vmor %vm430_vm10, %vm431_vm11 }
 0x121   :  { %v303_v54 = vmul.f32 %v279_v20, %v1129_v48  ;;  %v294_v7 = vmul.f32 %v252_v38, %v1129_v48  ;;  %v538_v16 = vmul.f32 %v1338_v43, %v500_v36  ;;  %v539_v20 = vmul.f32 %v1340_v29, %v501_v5  ;;  %266 = vadd.xlane.f32.xlu1 %v265_v19 }
 0x122   :  { %v1367_v57 = vpop.eup %843  ;;  %v328_v46 = vsub.f32 1.5, %v327_v0  ;;  %v1382_v1 = vadd.f32 1e-05, %v305_v6  ;;  %v427_v0 = vmul.f32 0.5, %v426_v27  ;;  %v502_v58 = vmul.f32 %v423_v10, %v1135_v55 }
 0x123   :  { %v1377_v53 = vadd.f32 1e-05, %v303_v54  ;;  %v1380_v61 = vpop.eup %845  ;;  %v1384_v2 = vadd.f32 1e-05, %v294_v7  ;;  %v355_v36 = vmul.f32 %v1367_v57, %v1331_v8  ;;  %v576_v6 = vadd.f32 %v1347_v47, %v538_v16 }
 0x124   :  { %v329_v9 = vmul.f32 %v842_v33, %v328_v46  ;;  %v335_v38 = vmul.f32 %v1380_v61, %v1333_v15  ;;  %v577_v32 = vadd.f32 %v1365_v31, %v539_v20  ;;  %v428_v46 = vsub.f32 1.5, %v427_v0 }
 0x125   :  { %847 = vrsqrt.f32 %v1377_v53  ;;  %664 = vmatmul.f32.vlgmr.msra.gmra.mxu2 %v576_v6  ;;  %vm341_vm13 = vweird.f32 %v1380_v61  ;;  %vm360_vm14 = vweird.f32 %v1331_v8  ;;  %vm361_vm15 = vweird.f32 %v1367_v57 }
 0x126   :  { %v336_v5 = vmul.f32 %v1380_v61, %v335_v38  ;;  %849 = vrsqrt.f32 %v1384_v2  ;;  %v333_v27 = vsel %vm332_vm9, %v842_v33, %v329_v9  ;;  %729 = vmatmul.f32.vlgmr.msra.gmra.mxu3 %v577_v32  ;;  %v356_v38 = vmul.f32 %v1367_v57, %v355_v36  ;;  %vm1450_vm0 = vmor %vm340_vm12, %vm341_vm13 }
 0x127   :  { %851 = vrsqrt.f32 %v1382_v1  ;;  %v264_v54 = vpop.xlane.xlu2 %263  ;;  %v484_v7 = vmul.f32 %v333_v27, %v1171_v24  ;;  %v540_v36 = vmul.f32 %v1338_v43, %v502_v58  ;;  %v429_v32 = vmul.f32 %v1329_v28, %v428_v46  ;;  %vm1532_vm10 = vmor %vm360_vm14, %vm361_vm15 }
 0x128   :  { %v258_v39 = vpop.xlane.xlu1 %257  ;;  %v282_v45 = vpop.xlane.xlu0 %281  ;;  %v337_v19 = vmul.f32 0.5, %v336_v5  ;;  %v298_v20 = vmul.f32 %v264_v54, %v1129_v48  ;;  %v485_v5 = vmul.f32 %v333_v27, %v1174_v25  ;;  %vm440_vm1 = vweird.f32 %v1377_v53 }
 0x129   :  { %v296_v30 = vmul.f32 %v258_v39, %v1129_v48  ;;  %v304_v16 = vmul.f32 %v282_v45, %v1129_v48  ;;  %v522_v24 = vmul.f32 %v1338_v43, %v484_v7  ;;  %vm350_vm2 = vweird.f32 %v1384_v2 }
 0x12a   :  { %v338_v54 = vsub.f32 1.5, %v337_v19  ;;  %v1429_v45 = vadd.f32 1e-05, %v298_v20  ;;  %v578_v19 = vadd.f32 %v1347_v47, %v540_v36  ;;  %vm460_vm11 = vweird.f32 %v1382_v1 }
 0x12b   :  { %v1407_v17 = vadd.f32 1e-05, %v296_v30  ;;  %v1409_v33 = vpop.eup %847  ;;  %v1412_v9 = vadd.f32 1e-05, %v304_v16  ;;  %v357_v30 = vmul.f32 0.5, %v356_v38  ;;  %v560_v27 = vadd.f32 %v1347_v47, %v522_v24 }
 0x12c   :  { %v1415_v55 = vpop.eup %849  ;;  %v435_v0 = vmul.f32 %v1409_v33, %v1377_v53  ;;  %v523_v16 = vmul.f32 %v1340_v29, %v485_v5  ;;  %v503_v38 = vmul.f32 %v423_v10, %v1138_v56  ;;  %v339_v41 = vmul.f32 %v1380_v61, %v338_v54 }
 0x12d   :  { %v1422_v6 = vpop.eup %851  ;;  %v345_v39 = vmul.f32 %v1415_v55, %v1384_v2  ;;  %853 = vrsqrt.f32 %v1407_v17  ;;  %640 = vmatmul.f32.vlgmr.msra.gmra.mxu0 %v560_v27  ;;  %v358_v24 = vsub.f32 1.5, %v357_v30  ;;  %667 = vmatmul.f32.gmra.mxu2 %v578_v19  ;;  %vm351_vm3 = vweird.f32 %v1415_v55 }
 0x12e   :  { %v436_v7 = vmul.f32 %v1409_v33, %v435_v0  ;;  %855 = vrsqrt.f32 %v1412_v9  ;;  %v455_v46 = vmul.f32 %v1422_v6, %v1382_v1  ;;  %v561_v10 = vadd.f32 %v1365_v31, %v523_v16  ;;  %vm352_vm6 = vmor %vm350_vm2, %vm351_vm3 }
 0x12f   :  { %v346_v25 = vmul.f32 %v1415_v55, %v345_v39  ;;  %v541_v36 = vmul.f32 %v1340_v29, %v503_v38  ;;  %857 = vrsqrt.f32 %v1429_v45  ;;  %v359_v38 = vmul.f32 %v1367_v57, %v358_v24 }
 0x130   :  { %v288_v58 = vpop.xlane.xlu1 %287  ;;  %v261_v20 = vpop.xlane.xlu0 %260  ;;  %v437_v5 = vmul.f32 0.5, %v436_v7  ;;  %705 = vmatmul.f32.vlgmr.msra.gmra.mxu1 %v561_v10  ;;  %v456_v19 = vmul.f32 %v1422_v6, %v455_v46  ;;  %vm441_vm5 = vweird.f32 %v1409_v33  ;;  %vm450_vm7 = vweird.f32 %v1412_v9 }
 0x131   :  { %v347_v0 = vmul.f32 0.5, %v346_v25  ;;  %v306_v39 = vmul.f32 %v288_v58, %v1129_v48  ;;  %v297_v12 = vmul.f32 %v261_v20, %v1129_v48  ;;  %v579_v15 = vadd.f32 %v1365_v31, %v541_v36  ;;  %vm1519_vm9 = vmor %vm440_vm1, %vm441_vm5 }
 0x132   :  { %v438_v46 = vsub.f32 1.5, %v437_v5  ;;  %v457_v24 = vmul.f32 0.5, %v456_v19  ;;  %vm370_vm12 = vweird.f32 %v1407_v17  ;;  %vm461_vm15 = vweird.f32 %v1422_v6 }
 0x133   :  { %v348_v54 = vsub.f32 1.5, %v347_v0  ;;  %v1458_v30 = vpop.eup %853  ;;  %v1462_v25 = vadd.f32 1e-05, %v306_v39  ;;  %v1464_v27 = vadd.f32 1e-05, %v297_v12  ;;  %v343_v12 = vsel %vm1450_vm0, %v1380_v61, %v339_v41  ;;  %732 = vmatmul.f32.gmra.mxu3 %v579_v15  ;;  %vm462_vm1 = vmor %vm460_vm11, %vm461_vm15 }
 0x134   :  { %v1466_v58 = vpop.eup %855  ;;  %v365_v16 = vmul.f32 %v1458_v30, %v1407_v17  ;;  %v486_v61 = vmul.f32 %v343_v12, %v1177_v26  ;;  %v433_v0 = vsel %vm1472_vm4, %v1329_v28, %v429_v32  ;;  %v487_v39 = vmul.f32 %v343_v12, %v1182_v34 }
 0x135   :  { %v349_v20 = vmul.f32 %v1415_v55, %v348_v54  ;;  %v445_v44 = vmul.f32 %v1466_v58, %v1412_v9  ;;  %859 = vrsqrt.f32 %v1462_v25  ;;  %v504_v2 = vmul.f32 %v433_v0, %v1147_v59  ;;  %v1507_v15 = vpop.eup %857 }
 0x136   :  { %861 = vrsqrt.f32 %v1464_v27  ;;  %v366_v56 = vmul.f32 %v1458_v30, %v365_v16  ;;  %v505_v10 = vmul.f32 %v433_v0, %v1150_v60  ;;  %v524_v5 = vmul.f32 %v1338_v43, %v486_v61 }
 0x137   :  { %v446_v41 = vmul.f32 %v1466_v58, %v445_v44  ;;  %v525_v54 = vmul.f32 %v1340_v29, %v487_v39  ;;  %v353_v26 = vsel %vm352_vm6, %v1415_v55, %v349_v20  ;;  %v439_v28 = vmul.f32 %v1409_v33, %v438_v46 }
 0x138   :  { %vm451_vm8 = vweird.f32 %v1466_v58  ;;  %v542_v34 = vmul.f32 %v1338_v43, %v504_v2  ;;  %v543_v32 = vmul.f32 %v1340_v29, %v505_v10  ;;  %v562_v7 = vadd.f32 %v1347_v47, %v524_v5 }
 0x139   :  { %v447_v36 = vmul.f32 0.5, %v446_v41  ;;  %v563_v19 = vadd.f32 %v1365_v31, %v525_v54  ;;  %v488_v16 = vmul.f32 %v353_v26, %v1216_v3  ;;  %v367_v53 = vmul.f32 0.5, %v366_v56  ;;  %vm1549_vm13 = vmor %vm450_vm7, %vm451_vm8 }
 0x13a   :  { %v580_v46 = vadd.f32 %v1347_v47, %v542_v34  ;;  %643 = vmatmul.f32.gmra.mxu0 %v562_v7  ;;  %v581_v8 = vadd.f32 %v1365_v31, %v543_v32  ;;  %v443_v39 = vsel %vm1519_vm9, %v1409_v33, %v439_v28  ;;  %v489_v56 = vmul.f32 %v353_v26, %v1219_v4 }
 0x13b   :  { %v1513_v59 = vpop.eup %859  ;;  %v448_v55 = vsub.f32 1.5, %v447_v36  ;;  %708 = vmatmul.f32.gmra.mxu1 %v563_v19  ;;  %v526_v0 = vmul.f32 %v1338_v43, %v488_v16  ;;  %v458_v2 = vsub.f32 1.5, %v457_v24  ;;  %v506_v10 = vmul.f32 %v443_v39, %v1206_v62 }
 0x13c   :  { %v1526_v12 = vpop.eup %861  ;;  %v465_v44 = vmul.f32 %v1513_v59, %v1462_v25  ;;  %670 = vmatmul.f32.gmra.mxu2 %v580_v46  ;;  %735 = vmatmul.f32.gmra.mxu3 %v581_v8  ;;  %v507_v36 = vmul.f32 %v443_v39, %v1209_v63  ;;  %v363_v9 = vsel %vm1532_vm10, %v1367_v57, %v359_v38  ;;  %v368_v5 = vsub.f32 1.5, %v367_v53 }
 0x13d   :  { %v449_v3 = vmul.f32 %v1466_v58, %v448_v55  ;;  %v375_v41 = vmul.f32 %v1526_v12, %v1464_v27  ;;  %v527_v32 = vmul.f32 %v1340_v29, %v489_v56  ;;  %v564_v33 = vadd.f32 %v1347_v47, %v526_v0 }
 0x13e   :  { %v466_v54 = vmul.f32 %v1513_v59, %v465_v44  ;;  %v544_v4 = vmul.f32 %v1338_v43, %v506_v10  ;;  %v545_v24 = vmul.f32 %v1340_v29, %v507_v36  ;;  %vm371_vm14 = vweird.f32 %v1458_v30 }
 0x13f   :  { %v376_v34 = vmul.f32 %v1526_v12, %v375_v41  ;;  %v453_v62 = vsel %vm1549_vm13, %v1466_v58, %v449_v3  ;;  %v565_v63 = vadd.f32 %v1365_v31, %v527_v32  ;;  %v490_v57 = vmul.f32 %v363_v9, %v1196_v51  ;;  %vm372_vm0 = vmor %vm370_vm12, %vm371_vm14 }
 0x140   :  { %v508_v38 = vmul.f32 %v453_v62, %v1241_v13  ;;  %v582_v26 = vadd.f32 %v1347_v47, %v544_v4  ;;  %v583_v28 = vadd.f32 %v1365_v31, %v545_v24  ;;  %v491_v60 = vmul.f32 %v363_v9, %v1199_v52 }
 0x141   :  { %v385_v55 = vmul.f32 %v1507_v15, %v1429_v45  ;;  %v369_v58 = vmul.f32 %v1458_v30, %v368_v5  ;;  %v377_v7 = vmul.f32 0.5, %v376_v34  ;;  %v509_v19 = vmul.f32 %v453_v62, %v1254_v11 }
 0x142   :  { %v459_v51 = vmul.f32 %v1422_v6, %v458_v2  ;;  %v467_v13 = vmul.f32 0.5, %v466_v54  ;;  %646 = vmatmul.f32.gmra.mxu0 %v564_v33  ;;  %v528_v52 = vmul.f32 %v1338_v43, %v490_v57  ;;  %v546_v16 = vmul.f32 %v1338_v43, %v508_v38 }
 0x143   :  { %711 = vmatmul.f32.gmra.mxu1 %v565_v63  ;;  %v529_v20 = vmul.f32 %v1340_v29, %v491_v60  ;;  %v547_v11 = vmul.f32 %v1340_v29, %v509_v19  ;;  %v386_v53 = vmul.f32 %v1507_v15, %v385_v55  ;;  %v378_v17 = vsub.f32 1.5, %v377_v7 }
 0x144   :  { %673 = vmatmul.f32.gmra.mxu2 %v582_v26  ;;  %738 = vmatmul.f32.gmra.mxu3 %v583_v28  ;;  %v373_v44 = vsel %vm372_vm0, %v1458_v30, %v369_v58  ;;  %v468_v46 = vsub.f32 1.5, %v467_v13  ;;  %vm470_vm2 = vweird.f32 %v1462_v25  ;;  %vm380_vm3 = vweird.f32 %v1464_v27 }
 0x145   :  { %v463_v1 = vsel %vm462_vm1, %v1422_v6, %v459_v51  ;;  %vm471_vm4 = vweird.f32 %v1513_v59  ;;  %vm381_vm5 = vweird.f32 %v1526_v12  ;;  %v566_v3 = vadd.f32 %v1347_v47, %v528_v52 }
 0x146   :  { %v584_v41 = vadd.f32 %v1347_v47, %v546_v16  ;;  %v567_v8 = vadd.f32 %v1365_v31, %v529_v20  ;;  %v585_v61 = vadd.f32 %v1365_v31, %v547_v11  ;;  %v492_v30 = vmul.f32 %v373_v44, %v1244_v42  ;;  %vm382_vm6 = vmor %vm380_vm3, %vm381_vm5 }
 0x147   :  { %v493_v0 = vmul.f32 %v373_v44, %v1247_v14  ;;  %v387_v39 = vmul.f32 0.5, %v386_v53  ;;  %v379_v27 = vmul.f32 %v1526_v12, %v378_v17  ;;  %v510_v6 = vmul.f32 %v463_v1, %v1235_v35  ;;  %vm472_vm7 = vmor %vm470_vm2, %vm471_vm4 }
 0x148   :  { %v469_v56 = vmul.f32 %v1513_v59, %v468_v46  ;;  %v511_v2 = vmul.f32 %v463_v1, %v1238_v40  ;;  %v530_v42 = vmul.f32 %v1338_v43, %v492_v30  ;;  %vm390_vm8 = vweird.f32 %v1429_v45 }
 0x149   :  { %v531_v14 = vmul.f32 %v1340_v29, %v493_v0  ;;  %v388_v10 = vsub.f32 1.5, %v387_v39  ;;  %v548_v35 = vmul.f32 %v1338_v43, %v510_v6  ;;  %v383_v36 = vsel %vm382_vm6, %v1526_v12, %v379_v27 }
 0x14a   :  { %649 = vmatmul.f32.gmra.mxu0 %v566_v3  ;;  %v549_v9 = vmul.f32 %v1340_v29, %v511_v2  ;;  %v473_v40 = vsel %vm472_vm7, %v1513_v59, %v469_v56  ;;  %vm391_vm9 = vweird.f32 %v1507_v15  ;;  %v568_v25 = vadd.f32 %v1347_v47, %v530_v42  ;;  %v1689_v3 = vld [vmem:[#allocation15_spill] sm:$0xff] }
 0x14b   :  { %714 = vmatmul.f32.gmra.mxu1 %v567_v8  ;;  %v569_v5 = vadd.f32 %v1365_v31, %v531_v14  ;;  %v494_v54 = vmul.f32 %v383_v36, %v1284_v37  ;;  %v495_v34 = vmul.f32 %v383_v36, %v1287_v23  ;;  %v389_v32 = vmul.f32 %v1507_v15, %v388_v10  ;;  %vm392_vm10 = vmor %vm390_vm8, %vm391_vm9  ;;  %v1690_v14 = vld [vmem:[#allocation16_spill] sm:$0xff] }
 0x14c   :  { %676 = vmatmul.f32.gmra.mxu2 %v584_v41  ;;  %741 = vmatmul.f32.gmra.mxu3 %v585_v61  ;;  %v586_v12 = vadd.f32 %v1347_v47, %v548_v35  ;;  %v512_v33 = vmul.f32 %v473_v40, %v1278_v21  ;;  %v587_v45 = vadd.f32 %v1365_v31, %v549_v9  ;;  %v1691_v35 = vld [vmem:[#allocation17_spill] sm:$0xff] }
 0x14d   :  { %v513_v59 = vmul.f32 %v473_v40, %v1281_v22  ;;  %v532_v4 = vmul.f32 %v1338_v43, %v494_v54  ;;  %v533_v37 = vmul.f32 %v1340_v29, %v495_v34  ;;  %v393_v24 = vsel %vm392_vm10, %v1507_v15, %v389_v32 }
 0x14e   :  { %v550_v23 = vmul.f32 %v1338_v43, %v512_v33  ;;  %v496_v57 = vmul.f32 %v393_v24, %v1266_v49  ;;  %v497_v22 = vmul.f32 %v393_v24, %v1269_v50 }
 0x14f   :  { %v551_v62 = vmul.f32 %v1340_v29, %v513_v59  ;;  %v570_v21 = vadd.f32 %v1347_v47, %v532_v4  ;;  %v571_v63 = vadd.f32 %v1365_v31, %v533_v37 }
 0x150   :  { %v588_v38 = vadd.f32 %v1347_v47, %v550_v23  ;;  %v534_v15 = vmul.f32 %v1338_v43, %v496_v57  ;;  %v535_v28 = vmul.f32 %v1340_v29, %v497_v22 }
 0x151   :  { %v589_v26 = vadd.f32 %v1365_v31, %v551_v62 }
 0x152   :  { %652 = vmatmul.f32.gmra.mxu0 %v568_v25  ;;  %v572_v60 = vadd.f32 %v1347_v47, %v534_v15  ;;  %v573_v55 = vadd.f32 %v1365_v31, %v535_v28 }
 0x153   :  { %717 = vmatmul.f32.gmra.mxu1 %v569_v5 }
 0x154   :  { %679 = vmatmul.f32.gmra.mxu2 %v586_v12  ;;  %744 = vmatmul.f32.gmra.mxu3 %v587_v45 }
 0x15a   :  { %655 = vmatmul.f32.gmra.mxu0 %v570_v21 }
 0x15b   :  { %720 = vmatmul.f32.gmra.mxu1 %v571_v63 }
 0x15c   :  { %682 = vmatmul.f32.gmra.mxu2 %v588_v38  ;;  %747 = vmatmul.f32.gmra.mxu3 %v589_v26 }
 0x162   :  { %658 = vmatmul.f32.gmra.mxu0 %v572_v60 }
 0x163   :  { %723 = vmatmul.f32.gmra.mxu1 %v573_v55 }
 0x18c   :  { %v291_v49 = vpop.xlane.xlu0 %290 }
 0x18d   :  { %v307_v50 = vmul.f32 %v291_v49, %v1129_v48 }
 0x18f   :  { %v323_v58 = vadd.f32 1e-05, %v307_v50 }
 0x191   :  { %863 = vrsqrt.f32 %v323_v58  ;;  %vm480_vm12 = vweird.f32 %v323_v58 }
 0x194   :  { %v267_v7 = vpop.xlane.xlu1 %266 }
 0x195   :  { %v299_v51 = vmul.f32 %v267_v7, %v1129_v48 }
 0x197   :  { %v864_v19 = vpop.eup %863  ;;  %v315_v52 = vadd.f32 1e-05, %v299_v51 }
 0x198   :  { %v475_v13 = vmul.f32 %v864_v19, %v323_v58  ;;  %vm481_vm11 = vweird.f32 %v864_v19 }
 0x199   :  { %865 = vrsqrt.f32 %v315_v52  ;;  %vm482_vm13 = vmor %vm480_vm12, %vm481_vm11  ;;  %vm400_vm15 = vweird.f32 %v315_v52 }
 0x19a   :  { %v476_v16 = vmul.f32 %v864_v19, %v475_v13 }
 0x19c   :  { %v477_v20 = vmul.f32 0.5, %v476_v16 }
 0x19e   :  { %v478_v11 = vsub.f32 1.5, %v477_v20 }
 0x19f   :  { %v866_v17 = vpop.eup %865 }
 0x1a0   :  { %v479_v53 = vmul.f32 %v864_v19, %v478_v11  ;;  %v395_v44 = vmul.f32 %v866_v17, %v315_v52  ;;  %vm401_vm14 = vweird.f32 %v866_v17 }
 0x1a1   :  { %vm402_vm0 = vmor %vm400_vm15, %vm401_vm14 }
 0x1a2   :  { %v483_v46 = vsel %vm482_vm13, %v864_v19, %v479_v53  ;;  %v396_v8 = vmul.f32 %v866_v17, %v395_v44 }
 0x1a3   :  { %v514_v1 = vmul.f32 %v483_v46, %v1310_v18  ;;  %v515_v41 = vmul.f32 %v483_v46, %v1689_v3 }
 0x1a4   :  { %v397_v30 = vmul.f32 0.5, %v396_v8 }
 0x1a5   :  { %v552_v48 = vmul.f32 %v1338_v43, %v514_v1  ;;  %v553_v61 = vmul.f32 %v1340_v29, %v515_v41 }
 0x1a6   :  { %v398_v27 = vsub.f32 1.5, %v397_v30 }
 0x1a7   :  { %v590_v0 = vadd.f32 %v1347_v47, %v552_v48  ;;  %v591_v39 = vadd.f32 %v1365_v31, %v553_v61 }
 0x1a8   :  { %v399_v6 = vmul.f32 %v866_v17, %v398_v27  ;;  %v665_v56 = vpop.f32.mrf.mxu2 }
 0x1a9   :  { %685 = vmatmul.f32.gmra.mxu2 %v590_v0  ;;  %750 = vmatmul.f32.gmra.mxu3 %v591_v39  ;;  %v730_v18 = vpop.f32.mrf.mxu3 }
 0x1aa   :  { %v731_v2 = vadd.f32 %v730_v18, %v665_v56  ;;  %v403_v42 = vsel %vm402_vm0, %v866_v17, %v399_v6  ;;  %v641_v9 = vpop.f32.mrf.mxu0 }
 0x1ab   :  { %v498_v10 = vmul.f32 %v403_v42, %v1690_v14  ;;  %v499_v36 = vmul.f32 %v403_v42, %v1691_v35 }
 0x1ac   :  { %762 = vst [vmem:[#allocation10 + $0x40] sm:$0xff] %v731_v2 }
 0x1ad   :  { %v536_v40 = vmul.f32 %v1338_v43, %v498_v10  ;;  %v537_v25 = vmul.f32 %v1340_v29, %v499_v36  ;;  %v706_v5 = vpop.f32.mrf.mxu1 }
 0x1ae   :  { %v707_v54 = vadd.f32 %v706_v5, %v641_v9 }
 0x1af   :  { %v574_v34 = vadd.f32 %v1347_v47, %v536_v40  ;;  %v575_v32 = vadd.f32 %v1365_v31, %v537_v25 }
 0x1b0   :  { %754 = vst [vmem:[#allocation10] sm:$0xff] %v707_v54  ;;  %v668_v12 = vpop.f32.mrf.mxu2 }
 0x1b1   :  { %661 = vmatmul.f32.gmra.mxu0 %v574_v34  ;;  %726 = vmatmul.f32.gmra.mxu1 %v575_v32 }
 0x1b6   :  { %v733_v33 = vpop.f32.mrf.mxu3 }
 0x1b7   :  { %v734_v45 = vadd.f32 %v733_v33, %v668_v12  ;;  %v644_v59 = vpop.f32.mrf.mxu0 }
 0x1b8   :  { %v709_v4 = vpop.f32.mrf.mxu1 }
 0x1b9   :  { %763 = vst [vmem:[#allocation10 + $0x48] sm:$0xff] %v734_v45  ;;  %v710_v37 = vadd.f32 %v709_v4, %v644_v59 }
 0x1bb   :  { %755 = vst [vmem:[#allocation10 + $0x8] sm:$0xff] %v710_v37 }
 0x1bf   :  { %v671_v43 = vpop.f32.mrf.mxu2  ;;  %v736_v23 = vpop.f32.mrf.mxu3 }
 0x1c0   :  { %v647_v29 = vpop.f32.mrf.mxu0  ;;  %v737_v24 = vadd.f32 %v736_v23, %v671_v43  ;;  %v712_v62 = vpop.f32.mrf.mxu1 }
 0x1c1   :  { %v713_v21 = vadd.f32 %v712_v62, %v647_v29 }
 0x1c2   :  { %764 = vst [vmem:[#allocation10 + $0x50] sm:$0xff] %v737_v24 }
 0x1c3   :  { %756 = vst [vmem:[#allocation10 + $0x10] sm:$0xff] %v713_v21 }
 0x1c7   :  { %v674_v47 = vpop.f32.mrf.mxu2  ;;  %v739_v31 = vpop.f32.mrf.mxu3 }
 0x1c8   :  { %v650_v63 = vpop.f32.mrf.mxu0  ;;  %v740_v57 = vadd.f32 %v739_v31, %v674_v47  ;;  %v715_v22 = vpop.f32.mrf.mxu1 }
 0x1c9   :  { %v716_v38 = vadd.f32 %v715_v22, %v650_v63 }
 0x1ca   :  { %765 = vst [vmem:[#allocation10 + $0x58] sm:$0xff] %v740_v57 }
 0x1cb   :  { %757 = vst [vmem:[#allocation10 + $0x18] sm:$0xff] %v716_v38 }
 0x1cf   :  { %v677_v26 = vpop.f32.mrf.mxu2  ;;  %v742_v15 = vpop.f32.mrf.mxu3 }
 0x1d0   :  { %v653_v28 = vpop.f32.mrf.mxu0  ;;  %v743_v60 = vadd.f32 %v742_v15, %v677_v26  ;;  %v718_v55 = vpop.f32.mrf.mxu1 }
 0x1d1   :  { %v719_v49 = vadd.f32 %v718_v55, %v653_v28 }
 0x1d2   :  { %766 = vst [vmem:[#allocation10 + $0x60] sm:$0xff] %v743_v60 }
 0x1d3   :  { %758 = vst [vmem:[#allocation10 + $0x20] sm:$0xff] %v719_v49 }
 0x1d7   :  { %v680_v50 = vpop.f32.mrf.mxu2  ;;  %v745_v58 = vpop.f32.mrf.mxu3 }
 0x1d8   :  { %v656_v7 = vpop.f32.mrf.mxu0  ;;  %v746_v19 = vadd.f32 %v745_v58, %v680_v50  ;;  %v721_v51 = vpop.f32.mrf.mxu1 }
 0x1d9   :  { %v722_v13 = vadd.f32 %v721_v51, %v656_v7 }
 0x1da   :  { %767 = vst [vmem:[#allocation10 + $0x68] sm:$0xff] %v746_v19 }
 0x1db   :  { %759 = vst [vmem:[#allocation10 + $0x28] sm:$0xff] %v722_v13 }
 0x1df   :  { %v683_v52 = vpop.f32.mrf.mxu2  ;;  %v748_v16 = vpop.f32.mrf.mxu3 }
 0x1e0   :  { %v659_v20 = vpop.f32.mrf.mxu0  ;;  %v749_v11 = vadd.f32 %v748_v16, %v683_v52  ;;  %v724_v53 = vpop.f32.mrf.mxu1 }
 0x1e1   :  { %v725_v17 = vadd.f32 %v724_v53, %v659_v20 }
 0x1e2   :  { %768 = vst [vmem:[#allocation10 + $0x70] sm:$0xff] %v749_v11 }
 0x1e3   :  { %760 = vst [vmem:[#allocation10 + $0x30] sm:$0xff] %v725_v17 }
 0x22c   :  { %v686_v44 = vpop.f32.mrf.mxu2  ;;  %v751_v46 = vpop.f32.mrf.mxu3 }
 0x22d   :  { %v752_v1 = vadd.f32 %v751_v46, %v686_v44 }
 0x22e   :  { %v662_v3 = vpop.f32.mrf.mxu0  ;;  %v727_v41 = vpop.f32.mrf.mxu1 }
 0x22f   :  { %769 = vst [vmem:[#allocation10 + $0x78] sm:$0xff] %v752_v1  ;;  %v728_v8 = vadd.f32 %v727_v41, %v662_v3 }
 0x231   :  { %761 = vst [vmem:[#allocation10 + $0x38] sm:$0xff] %v728_v8 }
 0x232   :  { %782 = dma.vmem_to_hbm [thread:$0]  %s775_s3, 2048, %s777_s13, [#allocation4], %s1001_s9, %s1001_s9, %s1002_s10  }
 0x233   :  { %993 = dma.done.wait [#allocation4], 2048  }
 0x234   :  { %994 = vsyncadd [#allocation4], 4294965248 }
 0x235   :  { %787 = vsyncpa [#allocation3], 1 }
 0x236   :  { %788 = vsyncpa [#allocation6], 1 }
 0x237   :  { %789 = vsyncpa [#allocation9], 1 }
 0x238   :  { %790 = vsyncpa [#allocation4], 1 }

</bundles_post_ra>
